<compile_context>
chip_gen: v5e
topology: v5e:2x2
jax: 0.10.0
libtpu: 0.0.40
codegen_flags: <defaults>
</compile_context>

<pallas_src>
import jax
import jax.numpy as jnp
from jax.experimental import pallas as pl
from jax.experimental.pallas import tpu as pltpu


def _round_up(x: int, m: int) -> int:
    return ((x + m - 1) // m) * m


def _mlp_kernel(x_ref, w1_ref, b1_ref, w2_ref, b2_ref, o_ref):
    # Cast the streamed f32 x tile to bf16 in-register (MXU-native dtype).
    x = x_ref[...].astype(jnp.bfloat16)
    # Layer 1: bf16 MXU matmul with f32 accumulation; bias + ReLU in f32.
    h = jnp.dot(x, w1_ref[...], preferred_element_type=jnp.float32)
    h = jnp.maximum(h + b1_ref[...], 0.0)
    # Layer 2: one cast back to bf16 for the MXU, f32 accumulation, no act.
    out = jnp.dot(h.astype(jnp.bfloat16), w2_ref[...],
                  preferred_element_type=jnp.float32)
    o_ref[...] = (out + b2_ref[...]).astype(o_ref.dtype)


def _vmem_cap_bytes() -> int:
    """Chip-derived VMEM cap with headroom for Mosaic internal scratch."""
    try:
        phys = int(pltpu.get_tpu_info().vmem_capacity_bytes)
    except Exception:
        phys = 64 << 20  # conservative default: v7x has 64 MiB per TensorCore
    return (phys * 7) // 8  # ~56 MiB on v7x, ~112 MiB on v5e/v6e


def _vmem_need_bytes(tile_b: int, d_in: int, h_p: int, d_out: int) -> int:
    """Conservative working-set estimate for one grid step."""
    # f32 x / out tiles, double-buffered by the pipeline.
    io = 2 * 4 * tile_b * (d_in + d_out)
    # Resident bf16 weights + f32 biases; constant index maps are not
    # re-DMA'd, but the default pipeline still allocates 2 buffers -> x2.
    weights = 2 * (2 * (d_in * h_p + h_p * d_out) + 4 * (h_p + d_out))
    # In-kernel temporaries: bf16 copy of the x tile, f32 hidden + bf16 copy.
    act = 2 * tile_b * d_in + (4 + 2) * tile_b * h_p
    return io + weights + act


def _choose_batch_tile(B: int, max_tile: int) -> int:
    """Sublane-aligned batch tile: >=2 tiles when B allows (v7x megacore) and
    an even tile count for short grids; ragged last tile avoids padding."""
    if B <= 8:
        return B  # single full-array block (always a legal block shape)
    tile = min(max_tile, max(8, _round_up(pl.cdiv(B, 2), 8)))
    n = pl.cdiv(B, tile)
    if 2 < n < 8 and n % 2 == 1:
        tile = max(8, _round_up(pl.cdiv(B, n + 1), 8))
    return tile


def net_forward(x, w1, b1, w2, b2, *, max_tile_b=1024):
    """x: (B, input_dim); w1: (input_dim, hidden); w2: (hidden, output).

    Weights are stored transposed vs. PyTorch (nn.Linear.weight.T) so the hot
    path is a plain `x @ W + b` on the MXU. Biases may be 1-D or (1, n).
    """
    x = jnp.asarray(x, jnp.float32)  # mirrors torch.FloatTensor(s)
    B, d_in = x.shape
    hid = w1.shape[1]
    d_out = w2.shape[1]
    h_p = _round_up(hid, 128)  # lane-dense hidden; weights are tiny & resident

    # Pad only the resident weights/biases (one-time, tiny); x/out stay raw.
    w1p = jnp.zeros((d_in, h_p), jnp.bfloat16)
    w1p = w1p.at[:, :hid].set(w1.astype(jnp.bfloat16))
    b1p = jnp.zeros((1, h_p), jnp.float32)
    b1p = b1p.at[:, :hid].set(jnp.reshape(b1, (1, -1)).astype(jnp.float32))
    w2p = jnp.zeros((h_p, d_out), jnp.bfloat16)
    w2p = w2p.at[:hid, :].set(w2.astype(jnp.bfloat16))
    b2p = jnp.reshape(b2, (1, -1)).astype(jnp.float32)

    # Pick the batch tile, then shrink it until the working set fits VMEM.
    cap = _vmem_cap_bytes()
    tile_b = _choose_batch_tile(B, max_tile_b)
    while tile_b > 8 and (_vmem_need_bytes(tile_b, d_in, h_p, d_out) * 3 // 2
                          + (4 << 20)) > cap:
        tile_b = max(8, _round_up(tile_b // 2, 8))
    # TODO(synk): if hidden_dim is so large that even tile_b=8 exceeds the
    # cap (v7x 64 MiB), add an "arbitrary" grid axis tiling h_p with an f32
    # accumulator instead of shrinking the batch tile further.
    vmem_limit = max(16 << 20,
                     min(_vmem_need_bytes(tile_b, d_in, h_p, d_out) * 3 // 2
                         + (4 << 20), cap))

    grid = (pl.cdiv(B, tile_b),)
    out = pl.pallas_call(
        _mlp_kernel,
        out_shape=jax.ShapeDtypeStruct((B, d_out), jnp.float32),
        grid_spec=pltpu.PrefetchScalarGridSpec(
            num_scalar_prefetch=0,
            grid=grid,
            in_specs=[
                # x: batch-tiled, streamed/double-buffered, native f32,
                # unpadded (last dim == full array dim).
                pl.BlockSpec((tile_b, d_in), lambda i: (i, 0)),
                # Weights & biases: constant block index -> resident in VMEM.
                pl.BlockSpec((d_in, h_p), lambda i: (0, 0)),
                pl.BlockSpec((1, h_p), lambda i: (0, 0)),
                pl.BlockSpec((h_p, d_out), lambda i: (0, 0)),
                pl.BlockSpec((1, d_out), lambda i: (0, 0)),
            ],
            # Output: unpadded narrow store (full last dim) -> no 128-lane
            # write amplification, no wrapper slice pass.
            out_specs=pl.BlockSpec((tile_b, d_out), lambda i: (i, 0)),
        ),
        compiler_params=pltpu.CompilerParams(
            # Batch tiles are independent -> megacore sharding on v7x.
            dimension_semantics=("parallel",),
            vmem_limit_bytes=vmem_limit,
        ),
    )(x, w1p, b1p, w2p, b2p)
    return out


def init_params(key, input_dim, hidden_dim, output_dim):
    """Mimics nn.Linear's U(-1/sqrt(fan_in), 1/sqrt(fan_in)) init.
    Weights are kept as (in, out) = PyTorch weight.T; biases are 1-D."""
    k1, k2, k3, k4 = jax.random.split(key, 4)
    bound1 = 1.0 / jnp.sqrt(input_dim)
    bound2 = 1.0 / jnp.sqrt(hidden_dim)
    w1 = jax.random.uniform(k1, (input_dim, hidden_dim), jnp.float32,
                            -bound1, bound1)
    b1 = jax.random.uniform(k2, (hidden_dim,), jnp.float32, -bound1, bound1)
    w2 = jax.random.uniform(k3, (hidden_dim, output_dim), jnp.float32,
                            -bound2, bound2)
    b2 = jax.random.uniform(k4, (output_dim,), jnp.float32, -bound2, bound2)
    return w1, b1, w2, b2


if __name__ == "__main__":
    key = jax.random.PRNGKey(0)
    batch, input_dim, hidden_dim, output_dim = 8, 16, 32, 8

    kx, kp = jax.random.split(key)
    x = jax.random.normal(kx, (batch, input_dim), dtype=jnp.float32)
    w1, b1, w2, b2 = init_params(kp, input_dim, hidden_dim, output_dim)

    out = net_forward(x, w1, b1, w2, b2)
    out = jax.block_until_ready(out)
    assert out.shape == (batch, output_dim)
    assert out.dtype == jnp.float32

    # Reference 1: mirrors the kernel math exactly (bf16 matmul inputs,
    # f32 accumulation, f32 bias/ReLU) -> tight tolerance.
    h_ref = jnp.dot(x.astype(jnp.bfloat16), w1.astype(jnp.bfloat16),
                    preferred_element_type=jnp.float32) + b1[None, :]
    h_ref = jnp.maximum(h_ref, 0.0)
    ref_bf16 = jnp.dot(h_ref.astype(jnp.bfloat16), w2.astype(jnp.bfloat16),
                       preferred_element_type=jnp.float32) + b2[None, :]
    assert jnp.allclose(out, ref_bf16, atol=1e-4, rtol=1e-4)

    # Reference 2: pure-f32 PyTorch-equivalent forward -> loose tolerance
    # (bf16 weight/activation quantization on the kernel hot path).
    ref_f32 = jnp.maximum(x @ w1 + b1[None, :], 0.0) @ w2 + b2[None, :]
    assert jnp.allclose(out, ref_f32, atol=5e-2, rtol=5e-2)

    print("KERNEL_OK")
</pallas_src>

<mosaic_0001>
module attributes {stable_mosaic.version = 11 : i64} {
  func.func @_mlp_kernel(%arg0: i32, %arg1: memref<8x16xf32, #tpu.memory_space<vmem>>, %arg2: memref<16x128xbf16, #tpu.memory_space<vmem>>, %arg3: memref<1x128xf32, #tpu.memory_space<vmem>>, %arg4: memref<128x8xbf16, #tpu.memory_space<vmem>>, %arg5: memref<1x8xf32, #tpu.memory_space<vmem>>, %arg6: memref<8x8xf32, #tpu.memory_space<vmem>>) attributes {dimension_semantics = [#tpu.dimension_semantics<parallel>], iteration_bounds = array<i64: 1>, scalar_prefetch = 0 : i64, scratch_operands = 0 : i64, tpu.core_type = #tpu.core_type<tc>, window_params = [{transform_indices = @transform_0, window_bounds = array<i64: 8, 16>}, {pipeline_mode = #tpu.pipeline_mode<synchronous>, transform_indices = @transform_1, window_bounds = array<i64: 16, 128>}, {pipeline_mode = #tpu.pipeline_mode<synchronous>, transform_indices = @transform_2, window_bounds = array<i64: 1, 128>}, {pipeline_mode = #tpu.pipeline_mode<synchronous>, transform_indices = @transform_3, window_bounds = array<i64: 128, 8>}, {pipeline_mode = #tpu.pipeline_mode<synchronous>, transform_indices = @transform_4, window_bounds = array<i64: 1, 8>}, {transform_indices = @transform_5, window_bounds = array<i64: 8, 8>}]} {
    %c0 = arith.constant 0 : index
    %c0_0 = arith.constant 0 : index
    %0 = vector.load %arg1[%c0, %c0_0] : memref<8x16xf32, #tpu.memory_space<vmem>>, vector<8x16xf32>
    %1 = arith.truncf %0 : vector<8x16xf32> to vector<8x16xbf16>
    %c0_1 = arith.constant 0 : index
    %c0_2 = arith.constant 0 : index
    %2 = vector.load %arg2[%c0_1, %c0_2] : memref<16x128xbf16, #tpu.memory_space<vmem>>, vector<16x128xbf16>
    %cst = arith.constant dense<0.000000e+00> : vector<8x128xf32>
    %3 = tpu.matmul %1, %2, %cst {dimension_numbers = #tpu.dot_dimension_numbers<[1], [0], [0], [1], [0, 0, 1, 1], [], []>} : vector<8x16xbf16>, vector<16x128xbf16>, vector<8x128xf32> -> vector<8x128xf32>
    %c0_3 = arith.constant 0 : index
    %c0_4 = arith.constant 0 : index
    %4 = vector.load %arg3[%c0_3, %c0_4] : memref<1x128xf32, #tpu.memory_space<vmem>>, vector<1x128xf32>
    %5 = vector.broadcast %4 : vector<1x128xf32> to vector<8x128xf32>
    %6 = arith.addf %3, %5 : vector<8x128xf32>
    %cst_5 = arith.constant 0.000000e+00 : f32
    %7 = vector.broadcast %cst_5 : f32 to vector<8x128xf32>
    %8 = arith.maximumf %6, %7 : vector<8x128xf32>
    %9 = arith.truncf %8 : vector<8x128xf32> to vector<8x128xbf16>
    %c0_6 = arith.constant 0 : index
    %c0_7 = arith.constant 0 : index
    %10 = vector.load %arg4[%c0_6, %c0_7] : memref<128x8xbf16, #tpu.memory_space<vmem>>, vector<128x8xbf16>
    %cst_8 = arith.constant dense<0.000000e+00> : vector<8x8xf32>
    %11 = tpu.matmul %9, %10, %cst_8 {dimension_numbers = #tpu.dot_dimension_numbers<[1], [0], [0], [1], [0, 0, 1, 1], [], []>} : vector<8x128xbf16>, vector<128x8xbf16>, vector<8x8xf32> -> vector<8x8xf32>
    %c0_9 = arith.constant 0 : index
    %c0_10 = arith.constant 0 : index
    %12 = vector.load %arg5[%c0_9, %c0_10] : memref<1x8xf32, #tpu.memory_space<vmem>>, vector<1x8xf32>
    %13 = vector.broadcast %12 : vector<1x8xf32> to vector<8x8xf32>
    %14 = arith.addf %11, %13 : vector<8x8xf32>
    %c0_11 = arith.constant 0 : index
    %c0_12 = arith.constant 0 : index
    %15 = vector.load %arg6[%c0_11, %c0_12] : memref<8x8xf32, #tpu.memory_space<vmem>>, vector<8x8xf32>
    tpu.vector_store %arg6[%c0_11, %c0_12], %14 {strides = array<i32>} : memref<8x8xf32, #tpu.memory_space<vmem>>, vector<8x8xf32>,
    return
  }
  func.func @transform_0(%arg0: i32) -> (i32, i32) {
    %c0_i32 = arith.constant 0 : i32
    %c0_i32_0 = arith.constant 0 : i32
    return %arg0, %c0_i32 : i32, i32
  }
  func.func @transform_1(%arg0: i32) -> (i32, i32) {
    %c0_i32 = arith.constant 0 : i32
    %c0_i32_0 = arith.constant 0 : i32
    %c0_i32_1 = arith.constant 0 : i32
    return %c0_i32, %c0_i32_0 : i32, i32
  }
  func.func @transform_2(%arg0: i32) -> (i32, i32) {
    %c0_i32 = arith.constant 0 : i32
    %c0_i32_0 = arith.constant 0 : i32
    %c0_i32_1 = arith.constant 0 : i32
    return %c0_i32, %c0_i32_0 : i32, i32
  }
  func.func @transform_3(%arg0: i32) -> (i32, i32) {
    %c0_i32 = arith.constant 0 : i32
    %c0_i32_0 = arith.constant 0 : i32
    %c0_i32_1 = arith.constant 0 : i32
    return %c0_i32, %c0_i32_0 : i32, i32
  }
  func.func @transform_4(%arg0: i32) -> (i32, i32) {
    %c0_i32 = arith.constant 0 : i32
    %c0_i32_0 = arith.constant 0 : i32
    %c0_i32_1 = arith.constant 0 : i32
    return %c0_i32, %c0_i32_0 : i32, i32
  }
  func.func @transform_5(%arg0: i32) -> (i32, i32) {
    %c0_i32 = arith.constant 0 : i32
    %c0_i32_0 = arith.constant 0 : i32
    return %arg0, %c0_i32 : i32, i32
  }
}

</mosaic_0001>

<bundles_post_ra>
// kernel: tpu_custom_call.1
= control target key start
LH: loop header
LB: loop body
LE: loop exit
PB: predicated region body
PF: predicated region fallthrough
CT: control target
= control target key end

     0   :  { %vm36_vm0 = vcmask 130048   ;;  %s299_s0 = inlined_call_operand.vmem [shape: f32[8,16], index: 0, kind: input, shape index: {}]   ;;  %s300_s1 = inlined_call_operand.vmem [shape: bf16[16,128], index: 1, kind: input, shape index: {}]   ;;  %s301_s2 = inlined_call_operand.vmem [shape: f32[1,128], index: 2, kind: input, shape index: {}]   ;;  %s302_s3 = inlined_call_operand.vmem [shape: bf16[128,8], index: 3, kind: input, shape index: {}]   ;;  %s303_s4 = inlined_call_operand.vmem [shape: f32[1,8], index: 4, kind: input, shape index: {}]   ;;  %s304_s5 = inlined_call_operand.hbm [shape: f32[8,8], index: 5, kind: output, shape index: {}]  }
   0x1   :  { %v191_v0 = vld [vmem:[%s300_s1] sm:$0xff]  ;;  %v199_v2 = vld [vmem:[%s302_s3 + $0x38] sm:$0xff]  ;;  %v198_v4 = vld [vmem:[%s302_s3 + $0x30] sm:$0xff] }
   0x2   :  { %v22_v1 = vld [vmem:[%s299_s0] sm:$0xff]  ;;  %47 = vmatpush.bf16.msra.mxu0 %v191_v0  ;;  %123 = vmatpush.bf16.msra.mxu1 %v199_v2 }
   0x3   :  { %v23_v3 = vpack.c.bf16 %v22_v1, %v22_v1 }
   0x4   :  { %10 = vsyncpa [#allocation3], 0  ;;  %v197_v5 = vld [vmem:[%s302_s3 + $0x28] sm:$0xff]  ;;  %v196_v6 = vld [vmem:[%s302_s3 + $0x20] sm:$0xff]  ;;  %s229_s15 = smov [#allocation2]   ;;  %vm136_vm1 = vcmask 64512  }
   0x5   :  { %158 = vmatmul.msk.bf16.vlgmr.msra.gmra.mxu0 %vm36_vm0, %v23_v3  ;;  %v195_v7 = vld [vmem:[%s302_s3 + $0x18] sm:$0xff]  ;;  %v194_v8 = vld [vmem:[%s302_s3 + $0x10] sm:$0xff]  ;;  %v193_v9 = vld [vmem:[%s302_s3 + $0x8] sm:$0xff]  ;;  %s143_s16 = sshll.u32 %s229_s15, 4  ;;  %s144_s16 = int_to_ptr.vmem [resolvable:$true] %s143_s16 }
   0x6   :  { %124 = vmatpush.bf16.msra.mxu1 %v198_v4  ;;  %v192_v10 = vld [vmem:[%s302_s3] sm:$0xff]  ;;  %s145_s3 = sshll.u32 %s304_s5, 4  ;;  %s146_s3 = int_to_ptr.hbm [resolvable:$true] %s145_s3 }
   0x7   :  { %v201_v11 = vld [vmem:[%s301_s2] ss:$0 sm:$0xff] }
   0x8   :  { %v202_v17 = vld [vmem:[%s303_s4] ss:$0 sm:$0xff] }
   0xa   :  { %125 = vmatpush.bf16.msra.mxu1 %v197_v5 }
   0xe   :  { %126 = vmatpush.bf16.msra.mxu1 %v196_v6 }
  0x12   :  { %127 = vmatpush.bf16.msra.mxu1 %v195_v7 }
  0x16   :  { %128 = vmatpush.bf16.msra.mxu1 %v194_v8 }
  0x1a   :  { %129 = vmatpush.bf16.msra.mxu1 %v193_v9 }
  0x1e   :  { %130 = vmatpush.bf16.msra.mxu1 %v192_v10 }
  0x82   :  { %v49_v12 = vpop.f32.mrf.mxu0 }
  0x83   :  { %v50_v13 = vadd.f32 %v201_v11, %v49_v12 }
  0x85   :  { %v53_v14 = vmax.f32 %v50_v13, 0.0 }
  0x87   :  { %v54_v15 = vpack.c.bf16 %v53_v14, %v53_v14 }
  0x89   :  { %131 = vmatmul.bf16.vlgmr.msra.gmra.mxu1 %v54_v15 }
  0x8a   :  { %v51_v16 = vpop.f32.mrf.mxu0 }
 0x106   :  { %v132_v18 = vpop.f32.mrf.mxu1 }
 0x107   :  { %v133_v19 = vadd.f32 %v202_v17, %v132_v18 }
 0x109   :  { %137 = vst.msk [vmem:[#allocation2] sm:$0xff] %vm136_vm1, %v133_v19 }
 0x10a   :  { %148 = dma.vmem_to_hbm [thread:$0]  %s144_s16, 128, %s146_s3, [#allocation3]  }
 0x10e   :  { %v134_v20 = vpop.f32.mrf.mxu1 }
 0x10f   :  { %227 = dma.done.wait [#allocation3], 128  }
 0x110   :  { %228 = vsyncadd [#allocation3], 4294967168 }
 0x111   :  { %153 = vsyncpa [#allocation3], 1 }

</bundles_post_ra>
